<compile_context>
chip_gen: v5e
topology: v5e:2x2
jax: 0.10.0
libtpu: 0.0.40
codegen_flags: <defaults>
</compile_context>

<pallas_src>
import math
import jax
import jax.numpy as jnp
from jax.experimental import pallas as pl
from jax.experimental.pallas import tpu as pltpu


def _round_up(x, m):
    return ((x + m - 1) // m) * m


# --------------------------------------------------------------------------- #
# Kernel body: fused Linear -> ReLU -> Linear on one row tile.
# --------------------------------------------------------------------------- #
def mlp_decoder_kernel(z_ref, w1_ref, b1_ref, w2_ref, b2_ref, out_ref):
    # In-kernel cast of the streamed activation tile to the MXU input dtype
    # (VPU op, avoids an extra HBM pad/cast pass in the wrapper).
    x = z_ref[...].astype(w1_ref.dtype)
    # Layer 1: Linear(L -> H_pad), f32 accumulation on the MXU, bias + ReLU (VPU, f32).
    h = jnp.dot(x, w1_ref[...], preferred_element_type=jnp.float32)
    h = jnp.maximum(h + b1_ref[...], 0.0)                    # (tile_n, H_pad) + (1, H_pad)
    # Layer 2: Linear(H_pad -> O_pad), f32 accumulation.
    o = jnp.dot(h.astype(w2_ref.dtype), w2_ref[...],
                preferred_element_type=jnp.float32)
    out_ref[...] = (o + b2_ref[...]).astype(out_ref.dtype)


# --------------------------------------------------------------------------- #
# One-time parameter preparation (pad feature dims to lane multiples + cast).
# --------------------------------------------------------------------------- #
def prepare_mlp_decoder_params(w1, b1, w2, b2, compute_dtype=jnp.bfloat16):
    """Pad H and O to multiples of 128 and cast weights to the MXU input dtype.

    Zero padding preserves the math: padded hidden units have zero weight and
    zero bias (ReLU(0) = 0) and padded output columns are sliced away after the
    kernel.  Call once and cache the result; reuse it across mlp_decoder calls.
    """
    L, H = w1.shape
    H2, O = w2.shape
    assert H2 == H and b1.shape == (H,) and b2.shape == (O,)
    H_pad, O_pad = _round_up(H, 128), _round_up(O, 128)
    w1c = jnp.zeros((L, H_pad), compute_dtype).at[:, :H].set(w1.astype(compute_dtype))
    w2c = jnp.zeros((H_pad, O_pad), compute_dtype).at[:H, :O].set(w2.astype(compute_dtype))
    b1c = jnp.zeros((1, H_pad), jnp.float32).at[0, :H].set(b1.astype(jnp.float32))
    b2c = jnp.zeros((1, O_pad), jnp.float32).at[0, :O].set(b2.astype(jnp.float32))
    return {"w1": w1c, "b1": b1c, "w2": w2c, "b2": b2c, "out_features": O}


# --------------------------------------------------------------------------- #
# Generation-aware tile / VMEM configuration.
# --------------------------------------------------------------------------- #
def _vmem_capacity_bytes():
    try:
        return int(pltpu.get_tpu_info().vmem_capacity_bytes)
    except Exception:
        return 64 << 20  # conservative (v7x-sized) fallback


def _pick_config(N, L, H_pad, O_pad, in_sz, out_sz, z_sz, tile_n):
    cap = _vmem_capacity_bytes()
    # Scoped-VMEM ceiling: ~48 MiB on v7x (64 MiB physical / TC), <=100 MiB on v5e/v6e.
    limit_cap = min(int(0.75 * cap), 100 << 20)
    if tile_n is None:
        tile_n = 512 if cap <= (64 << 20) else 1024       # v7x vs v5e/v6e defaults
    # Multiple of 16 (bf16 (16,128) minimum sublane tile); never exceed the row count.
    tile_n = max(16, min(_round_up(tile_n, 16), _round_up(N, 16)))

    def budget(t):
        # Double-buffered streamed z / out tiles + single-buffered resident weights/biases.
        return (2 * t * (L * z_sz + O_pad * out_sz)
                + (L * H_pad + H_pad * O_pad) * in_sz
                + (H_pad + O_pad) * 4)

    headroom = 8 << 20
    while tile_n > 256 and budget(tile_n) + headroom > limit_cap:
        tile_n = max(256, _round_up(tile_n // 2, 16))
    vmem_limit = int(max(16 << 20, min(budget(tile_n) + headroom, limit_cap)))
    return tile_n, vmem_limit


def _resident_spec(shape):
    """Constant-index (VMEM-resident) operand: single-buffered — its block never
    changes across the grid, so double-buffering only wastes VMEM."""
    index_map = lambda i: (0, 0)
    try:
        return pl.BlockSpec(shape, index_map, pipeline_mode=pl.Buffered(1))
    except (TypeError, ValueError):  # jax version without pipeline_mode / Buffered(1)
        return pl.BlockSpec(shape, index_map)


# --------------------------------------------------------------------------- #
# Wrapper.
# --------------------------------------------------------------------------- #
def mlp_decoder(z, params, *, tile_n=None):
    """z: [N, L] -> [N, out_features] using params from prepare_mlp_decoder_params."""
    w1, b1, w2, b2 = params["w1"], params["b1"], params["w2"], params["b2"]
    O = params["out_features"]
    N, L = z.shape
    L_w, H_pad = w1.shape
    _, O_pad = w2.shape
    assert L_w == L, "latent dim mismatch between z and prepared params"
    out_dtype = z.dtype

    in_sz = jnp.dtype(w1.dtype).itemsize
    out_sz = jnp.dtype(out_dtype).itemsize
    z_sz = jnp.dtype(z.dtype).itemsize
    tile_n, vmem_limit = _pick_config(N, L, H_pad, O_pad, in_sz, out_sz, z_sz, tile_n)
    num_tiles = pl.cdiv(N, tile_n)

    cost = pl.CostEstimate(
        flops=2 * N * (L * H_pad + H_pad * O_pad),
        transcendentals=0,
        bytes_accessed=(N * L * z_sz
                        + (L * H_pad + H_pad * O_pad) * in_sz
                        + (H_pad + O_pad) * 4
                        + N * O_pad * out_sz),
    )

    out_padded = pl.pallas_call(
        mlp_decoder_kernel,
        out_shape=jax.ShapeDtypeStruct((N, O_pad), out_dtype),
        grid_spec=pltpu.PrefetchScalarGridSpec(
            num_scalar_prefetch=0,
            grid=(num_tiles,),
            in_specs=[
                # Streamed activation tile; ragged last block handled by the cdiv
                # grid, latent axis full-extent -> no wrapper-side copy of z.
                pl.BlockSpec((tile_n, L), lambda i: (i, 0)),
                _resident_spec((L, H_pad)),        # w1 (resident)
                _resident_spec((1, H_pad)),        # b1 (resident)
                _resident_spec((H_pad, O_pad)),    # w2 (resident)
                _resident_spec((1, O_pad)),        # b2 (resident)
            ],
            out_specs=pl.BlockSpec((tile_n, O_pad), lambda i: (i, 0)),
        ),
        compiler_params=pltpu.CompilerParams(
            dimension_semantics=("parallel",),     # v7x: rows split across 2 TCs
            vmem_limit_bytes=vmem_limit,
        ),
        cost_estimate=cost,
    )(z, w1, b1, w2, b2)

    # Drop the lane padding on the output feature axis.
    return out_padded[:, :O] if O_pad != O else out_padded


def init_linear_params(key, in_features, out_features, dtype=jnp.float32):
    """Deterministic PyTorch-style (kaiming-uniform) init; W stored [in, out]."""
    kw, kb = jax.random.split(key)
    bound_w = math.sqrt(1.0 / in_features) * math.sqrt(3.0)  # kaiming_uniform, a=sqrt(5)
    w = jax.random.uniform(kw, (in_features, out_features), dtype,
                           minval=-bound_w, maxval=bound_w)
    bound_b = 1.0 / math.sqrt(in_features)
    b = jax.random.uniform(kb, (out_features,), dtype,
                           minval=-bound_b, maxval=bound_b)
    return w, b


if __name__ == "__main__":
    # Small shapes consistent with MLPDecoder(latent_dim, hidden_dim, out_channels).
    N, LATENT, HIDDEN, OUT = 16, 16, 32, 8

    key = jax.random.PRNGKey(0)
    kz, k1, k2 = jax.random.split(key, 3)

    z = jax.random.normal(kz, (N, LATENT), jnp.float32)
    w1, b1 = init_linear_params(k1, LATENT, HIDDEN)
    w2, b2 = init_linear_params(k2, HIDDEN, OUT)

    # One-time weight preparation (pad + cast); cache and reuse across calls.
    params = prepare_mlp_decoder_params(w1, b1, w2, b2)

    out = mlp_decoder(z, params)
    out = jax.block_until_ready(out)

    # Pure-JAX f32 reference; tolerance loosened for bf16 MXU inputs.
    ref = jnp.maximum(z @ w1 + b1, 0.0) @ w2 + b2
    assert out.shape == (N, OUT)
    assert out.dtype == z.dtype
    assert jnp.allclose(out, ref, atol=5e-2, rtol=5e-2), "mismatch vs reference"

    print("KERNEL_OK")
</pallas_src>

<mosaic_0001>
module attributes {stable_mosaic.version = 11 : i64} {
  func.func @mlp_decoder_kernel(%arg0: i32, %arg1: memref<16x16xf32, #tpu.memory_space<vmem>>, %arg2: memref<16x128xbf16, #tpu.memory_space<vmem>>, %arg3: memref<1x128xf32, #tpu.memory_space<vmem>>, %arg4: memref<128x128xbf16, #tpu.memory_space<vmem>>, %arg5: memref<1x128xf32, #tpu.memory_space<vmem>>, %arg6: memref<16x128xf32, #tpu.memory_space<vmem>>) attributes {dimension_semantics = [#tpu.dimension_semantics<parallel>], iteration_bounds = array<i64: 1>, scalar_prefetch = 0 : i64, scratch_operands = 0 : i64, tpu.core_type = #tpu.core_type<tc>, window_params = [{transform_indices = @transform_0, window_bounds = array<i64: 16, 16>}, {pipeline_mode = #tpu.pipeline_mode<synchronous>, transform_indices = @transform_1, window_bounds = array<i64: 16, 128>}, {pipeline_mode = #tpu.pipeline_mode<synchronous>, transform_indices = @transform_2, window_bounds = array<i64: 1, 128>}, {pipeline_mode = #tpu.pipeline_mode<synchronous>, transform_indices = @transform_3, window_bounds = array<i64: 128, 128>}, {pipeline_mode = #tpu.pipeline_mode<synchronous>, transform_indices = @transform_4, window_bounds = array<i64: 1, 128>}, {transform_indices = @transform_5, window_bounds = array<i64: 16, 128>}]} {
    %c0 = arith.constant 0 : index
    %c0_0 = arith.constant 0 : index
    %0 = vector.load %arg1[%c0, %c0_0] : memref<16x16xf32, #tpu.memory_space<vmem>>, vector<16x16xf32>
    %1 = arith.truncf %0 : vector<16x16xf32> to vector<16x16xbf16>
    %c0_1 = arith.constant 0 : index
    %c0_2 = arith.constant 0 : index
    %2 = vector.load %arg2[%c0_1, %c0_2] : memref<16x128xbf16, #tpu.memory_space<vmem>>, vector<16x128xbf16>
    %cst = arith.constant dense<0.000000e+00> : vector<16x128xf32>
    %3 = tpu.matmul %1, %2, %cst {dimension_numbers = #tpu.dot_dimension_numbers<[1], [0], [0], [1], [0, 0, 1, 1], [], []>} : vector<16x16xbf16>, vector<16x128xbf16>, vector<16x128xf32> -> vector<16x128xf32>
    %c0_3 = arith.constant 0 : index
    %c0_4 = arith.constant 0 : index
    %4 = vector.load %arg3[%c0_3, %c0_4] : memref<1x128xf32, #tpu.memory_space<vmem>>, vector<1x128xf32>
    %5 = vector.broadcast %4 : vector<1x128xf32> to vector<16x128xf32>
    %6 = arith.addf %3, %5 : vector<16x128xf32>
    %cst_5 = arith.constant 0.000000e+00 : f32
    %7 = vector.broadcast %cst_5 : f32 to vector<16x128xf32>
    %8 = arith.maximumf %6, %7 : vector<16x128xf32>
    %9 = arith.truncf %8 : vector<16x128xf32> to vector<16x128xbf16>
    %c0_6 = arith.constant 0 : index
    %c0_7 = arith.constant 0 : index
    %10 = vector.load %arg4[%c0_6, %c0_7] : memref<128x128xbf16, #tpu.memory_space<vmem>>, vector<128x128xbf16>
    %cst_8 = arith.constant dense<0.000000e+00> : vector<16x128xf32>
    %11 = tpu.matmul %9, %10, %cst_8 {dimension_numbers = #tpu.dot_dimension_numbers<[1], [0], [0], [1], [0, 0, 1, 1], [], []>} : vector<16x128xbf16>, vector<128x128xbf16>, vector<16x128xf32> -> vector<16x128xf32>
    %c0_9 = arith.constant 0 : index
    %c0_10 = arith.constant 0 : index
    %12 = vector.load %arg5[%c0_9, %c0_10] : memref<1x128xf32, #tpu.memory_space<vmem>>, vector<1x128xf32>
    %13 = vector.broadcast %12 : vector<1x128xf32> to vector<16x128xf32>
    %14 = arith.addf %11, %13 : vector<16x128xf32>
    %c0_11 = arith.constant 0 : index
    %c0_12 = arith.constant 0 : index
    %15 = vector.load %arg6[%c0_11, %c0_12] : memref<16x128xf32, #tpu.memory_space<vmem>>, vector<16x128xf32>
    tpu.vector_store %arg6[%c0_11, %c0_12], %14 {strides = array<i32>} : memref<16x128xf32, #tpu.memory_space<vmem>>, vector<16x128xf32>,
    return
  }
  func.func @transform_0(%arg0: i32) -> (i32, i32) {
    %c0_i32 = arith.constant 0 : i32
    %c0_i32_0 = arith.constant 0 : i32
    return %arg0, %c0_i32 : i32, i32
  }
  func.func @transform_1(%arg0: i32) -> (i32, i32) {
    %c0_i32 = arith.constant 0 : i32
    %c0_i32_0 = arith.constant 0 : i32
    %c0_i32_1 = arith.constant 0 : i32
    return %c0_i32, %c0_i32_0 : i32, i32
  }
  func.func @transform_2(%arg0: i32) -> (i32, i32) {
    %c0_i32 = arith.constant 0 : i32
    %c0_i32_0 = arith.constant 0 : i32
    %c0_i32_1 = arith.constant 0 : i32
    return %c0_i32, %c0_i32_0 : i32, i32
  }
  func.func @transform_3(%arg0: i32) -> (i32, i32) {
    %c0_i32 = arith.constant 0 : i32
    %c0_i32_0 = arith.constant 0 : i32
    %c0_i32_1 = arith.constant 0 : i32
    return %c0_i32, %c0_i32_0 : i32, i32
  }
  func.func @transform_4(%arg0: i32) -> (i32, i32) {
    %c0_i32 = arith.constant 0 : i32
    %c0_i32_0 = arith.constant 0 : i32
    %c0_i32_1 = arith.constant 0 : i32
    return %c0_i32, %c0_i32_0 : i32, i32
  }
  func.func @transform_5(%arg0: i32) -> (i32, i32) {
    %c0_i32 = arith.constant 0 : i32
    %c0_i32_0 = arith.constant 0 : i32
    return %arg0, %c0_i32 : i32, i32
  }
}

</mosaic_0001>

<bundles_post_ra>
// kernel: tpu_custom_call.1
= control target key start
LH: loop header
LB: loop body
LE: loop exit
PB: predicated region body
PF: predicated region fallthrough
CT: control target
= control target key end

     0   :  { %10 = vsyncpa [#allocation3], 0  ;;  %s429_s0 = inlined_call_operand.hbm [shape: f32[16,16], index: 0, kind: input, shape index: {}]   ;;  %s430_s1 = inlined_call_operand.hbm [shape: bf16[16,128], index: 1, kind: input, shape index: {}]   ;;  %s431_s2 = inlined_call_operand.vmem [shape: f32[1,128], index: 2, kind: input, shape index: {}]   ;;  %s432_s3 = inlined_call_operand.hbm [shape: bf16[128,128], index: 3, kind: input, shape index: {}]   ;;  %s433_s4 = inlined_call_operand.vmem [shape: f32[1,128], index: 4, kind: input, shape index: {}]   ;;  %s434_s5 = inlined_call_operand.hbm [shape: f32[16,128], index: 5, kind: output, shape index: {}]  }
   0x1   :  { %11 = vsyncpa [#allocation6], 0  ;;  %s30_s20 = sshll.u32 %s430_s1, 4  ;;  %s31_s20 = int_to_ptr.hbm [resolvable:$true] %s30_s20 }
   0x2   :  { %12 = vsyncpa [#allocation4], 0  ;;  %s367_s21 = smov [#allocation5]   ;;  %s17_s25 = sshll.u32 %s429_s0, 4  ;;  %s18_s25 = int_to_ptr.hbm [resolvable:$true] %s17_s25 }
   0x3   :  { %s32_s22 = sshll.u32 %s367_s21, 4  ;;  %s368_s26 = smov 64   ;;  %s33_s22 = int_to_ptr.vmem [resolvable:$true] %s32_s22 }
   0x4   :  { %s369_s27 = smov 4   ;;  %s370_s28 = smov [#allocation2]  }
   0x5   :  { %38 = dma.hbm_to_vmem [thread:$0]  %s31_s20, 128, %s33_s22, [#allocation6], %s368_s26, %s368_s26, %s369_s27  }
   0x6   :  { %s19_s29 = sshll.u32 %s370_s28, 4  ;;  %s371_s30 = smov 128   ;;  %s20_s29 = int_to_ptr.vmem [resolvable:$true] %s19_s29 }
   0x7   :  { %s372_s6 = smov 8   ;;  %s45_s8 = sshll.u32 %s432_s3, 4  ;;  %s46_s8 = int_to_ptr.hbm [resolvable:$true] %s45_s8 }
   0x8   :  { %25 = dma.hbm_to_vmem [thread:$0]  %s18_s25, 256, %s20_s29, [#allocation3], %s371_s30, %s371_s30, %s372_s6  }
   0x9   :  { %s373_s9 = smov [#allocation7]  }
   0xa   :  { %s47_s0 = sshll.u32 %s373_s9, 4  ;;  %s48_s0 = int_to_ptr.vmem [resolvable:$true] %s47_s0 }
   0xb   :  { %53 = dma.hbm_to_vmem [thread:$0]  %s46_s8, 1024, %s48_s0, [#allocation6], %s368_s26, %s368_s26, %s369_s27  }
   0xc   :  { %361 = dma.done.wait [#allocation3], 256  }
   0xd   :  { %362 = vsyncadd [#allocation3], 4294967040 }
   0xe   :  { %363 = dma.done.wait [#allocation6], 1152  }
   0xf   :  { %364 = vsyncadd [#allocation6], 4294966144  ;;  %v246_v0 = vld [vmem:[#allocation5] sm:$0xff]  ;;  %v69_v1 = vld [vmem:[#allocation2] sm:$0xff]  ;;  %vm84_vm0 = vcmask 130048   ;;  %s374_s13 = smov [#allocation8]  }
  0x10   :  { %v70_v2 = vld [vmem:[#allocation2 + $0x8] sm:$0xff]  ;;  %v254_v4 = vld [vmem:[#allocation7 + $0x38] sm:$0xff]  ;;  %95 = vmatpush.bf16.msra.mxu0 %v246_v0  ;;  %v252_v6 = vld [vmem:[#allocation7 + $0x28] sm:$0xff]  ;;  %s193_s14 = sshll.u32 %s374_s13, 4  ;;  %s194_s14 = int_to_ptr.vmem [resolvable:$true] %s193_s14 }
  0x11   :  { %v71_v3 = vpack.c.bf16 %v70_v2, %v69_v1  ;;  %173 = vmatpush.bf16.msra.mxu1 %v254_v4  ;;  %v253_v5 = vld [vmem:[#allocation7 + $0x30] sm:$0xff]  ;;  %v251_v7 = vld [vmem:[#allocation7 + $0x20] sm:$0xff]  ;;  %v250_v8 = vld [vmem:[#allocation7 + $0x18] sm:$0xff] }
  0x12   :  { %v249_v9 = vld [vmem:[#allocation7 + $0x10] sm:$0xff]  ;;  %v248_v10 = vld [vmem:[#allocation7 + $0x8] sm:$0xff]  ;;  %v247_v11 = vld [vmem:[#allocation7] sm:$0xff] }
  0x13   :  { %213 = vmatmul.msk.bf16.vlgmr.msra.gmra.mxu0 %vm84_vm0, %v71_v3  ;;  %v263_v13 = vld [vmem:[%s431_s2] ss:$0 sm:$0xff]  ;;  %s195_s2 = sshll.u32 %s434_s5, 4  ;;  %s196_s2 = int_to_ptr.hbm [resolvable:$true] %s195_s2 }
  0x14   :  { %v264_v20 = vld [vmem:[%s433_s4] ss:$0 sm:$0xff] }
  0x15   :  { %174 = vmatpush.bf16.msra.mxu1 %v253_v5 }
  0x19   :  { %175 = vmatpush.bf16.msra.mxu1 %v252_v6 }
  0x1d   :  { %176 = vmatpush.bf16.msra.mxu1 %v251_v7 }
  0x21   :  { %177 = vmatpush.bf16.msra.mxu1 %v250_v8 }
  0x25   :  { %178 = vmatpush.bf16.msra.mxu1 %v249_v9 }
  0x29   :  { %179 = vmatpush.bf16.msra.mxu1 %v248_v10 }
  0x2d   :  { %180 = vmatpush.bf16.msra.mxu1 %v247_v11 }
  0x90   :  { %v97_v12 = vpop.f32.mrf.mxu0 }
  0x91   :  { %v98_v14 = vadd.f32 %v263_v13, %v97_v12 }
  0x93   :  { %v102_v17 = vmax.f32 %v98_v14, 0.0 }
  0x98   :  { %v99_v15 = vpop.f32.mrf.mxu0 }
  0x99   :  { %v100_v16 = vadd.f32 %v263_v13, %v99_v15 }
  0x9b   :  { %v103_v18 = vmax.f32 %v100_v16, 0.0 }
  0x9d   :  { %v104_v19 = vpack.c.bf16 %v103_v18, %v102_v17 }
  0x9f   :  { %181 = vmatmul.bf16.vlgmr.msra.gmra.mxu1 %v104_v19 }
 0x11c   :  { %v182_v21 = vpop.f32.mrf.mxu1 }
 0x11d   :  { %v183_v22 = vadd.f32 %v264_v20, %v182_v21 }
 0x11f   :  { %187 = vst [vmem:[#allocation8] sm:$0xff] %v183_v22 }
 0x124   :  { %v184_v23 = vpop.f32.mrf.mxu1 }
 0x125   :  { %v185_v24 = vadd.f32 %v264_v20, %v184_v23 }
 0x127   :  { %188 = vst [vmem:[#allocation8 + $0x8] sm:$0xff] %v185_v24 }
 0x128   :  { %201 = dma.vmem_to_hbm [thread:$0]  %s194_s14, 256, %s196_s2, [#allocation4], %s371_s30, %s371_s30, %s372_s6  }
 0x129   :  { %365 = dma.done.wait [#allocation4], 256  }
 0x12a   :  { %366 = vsyncadd [#allocation4], 4294967040 }
 0x12b   :  { %206 = vsyncpa [#allocation3], 1 }
 0x12c   :  { %207 = vsyncpa [#allocation6], 1 }
 0x12d   :  { %208 = vsyncpa [#allocation4], 1 }

</bundles_post_ra>
